<compile_context>
chip_gen: v6e
topology: v6e:2x2x1
jax: 0.10.0
libtpu: 0.0.40
codegen_flags: <defaults>
</compile_context>

<pallas_src>
import functools

import jax
import jax.numpy as jnp
from jax.experimental import pallas as pl
from jax.experimental.pallas import tpu as pltpu


def autoencoder_kernel(x_ref, w1t_ref, b1_ref, w2t_ref, b2_ref, out_ref):
    # Cast x on the VPU (free under the pipeline); MXU matmuls in bf16 with
    # f32 accumulation.
    x = x_ref[...].astype(jnp.bfloat16)                      # (TB, Q) bf16

    # encoder: sigmoid(x @ W1^T + b1) -- W1^T is pre-transposed to (Q, K).
    h = jnp.dot(x, w1t_ref[...], preferred_element_type=jnp.float32)
    h = jax.nn.sigmoid(h + b1_ref[...])                      # (TB, K) f32

    # decoder: sigmoid(h @ W2^T + b2) -- W2^T is pre-transposed to (K, Q).
    o = jnp.dot(h.astype(jnp.bfloat16), w2t_ref[...],
                preferred_element_type=jnp.float32)
    out_ref[...] = jax.nn.sigmoid(o + b2_ref[...]).astype(out_ref.dtype)


def autoencoder_forward(x, w1, b1, w2, b2, *, tb=512, out_dtype=jnp.float32):
    """Fused AutoEncoder forward.

    x: (B, Q) f32; w1: (K, Q); b1: (K,); w2: (Q, K); b2: (Q,) -> (B, Q).
    """
    B, Q = x.shape
    K = w1.shape[0]

    # One-time prep of constant parameters: transpose to the standard NN
    # contraction layout and downcast to bf16 (MXU-native on v5e/v6e/v7x).
    w1t = w1.T.astype(jnp.bfloat16)                  # (Q, K)
    w2t = w2.T.astype(jnp.bfloat16)                  # (K, Q)
    b1_2d = b1.reshape(1, K).astype(jnp.float32)
    b2_2d = b2.reshape(1, Q).astype(jnp.float32)

    # Batch tile: as large as `tb`, but clamped so the grid keeps >=2 steps
    # (keeps both v7x TensorCores busy); multiple of 8 for sublane alignment.
    half = pl.cdiv(B, 2)
    TB = min(tb, max(8, ((half + 7) // 8) * 8))
    grid = (pl.cdiv(B, TB),)    # ragged last block handled by Pallas (row-wise op)

    return pl.pallas_call(
        autoencoder_kernel,
        out_shape=jax.ShapeDtypeStruct((B, Q), out_dtype),
        grid=grid,
        in_specs=[
            pl.BlockSpec((TB, Q), lambda i: (i, 0)),   # x: batch-tiled, f32 in HBM
            pl.BlockSpec((Q, K), lambda i: (0, 0)),    # W1^T: resident
            pl.BlockSpec((1, K), lambda i: (0, 0)),    # b1:   resident
            pl.BlockSpec((K, Q), lambda i: (0, 0)),    # W2^T: resident
            pl.BlockSpec((1, Q), lambda i: (0, 0)),    # b2:   resident
        ],
        out_specs=pl.BlockSpec((TB, Q), lambda i: (i, 0)),
        compiler_params=pltpu.CompilerParams(
            dimension_semantics=("parallel",),
        ),
    )(x, w1t, b1_2d, w2t, b2_2d)


def _reference(x, w1, b1, w2, b2):
    h = jax.nn.sigmoid(x @ w1.T + b1)
    return jax.nn.sigmoid(h @ w2.T + b2)


if __name__ == "__main__":
    # Shapes consistent with the module: num_question=256, k=128, batch=256
    # (large enough to exercise a >=2-step batch grid / megacore split).
    B, Q, K = 256, 256, 128

    key = jax.random.PRNGKey(0)
    kx, kw1, kb1, kw2, kb2 = jax.random.split(key, 5)

    x = jax.random.normal(kx, (B, Q), dtype=jnp.float32)

    # Deterministic init mimicking nn.Linear default: U(-1/sqrt(fan_in), ...).
    lim1 = 1.0 / (Q ** 0.5)
    lim2 = 1.0 / (K ** 0.5)
    w1 = jax.random.uniform(kw1, (K, Q), minval=-lim1, maxval=lim1, dtype=jnp.float32)
    b1 = jax.random.uniform(kb1, (K,), minval=-lim1, maxval=lim1, dtype=jnp.float32)
    w2 = jax.random.uniform(kw2, (Q, K), minval=-lim2, maxval=lim2, dtype=jnp.float32)
    b2 = jax.random.uniform(kb2, (Q,), minval=-lim2, maxval=lim2, dtype=jnp.float32)

    fwd = jax.jit(functools.partial(autoencoder_forward, tb=512))
    out = jax.block_until_ready(fwd(x, w1, b1, w2, b2))

    ref = _reference(x, w1, b1, w2, b2)
    assert out.shape == (B, Q)
    # bf16 matmul operands (f32 accumulation) -> relaxed tolerance vs f32 reference.
    assert jnp.allclose(out, ref, atol=2e-2, rtol=2e-2), "mismatch vs reference"

    print("KERNEL_OK")
</pallas_src>

<mosaic_0001>
module attributes {stable_mosaic.version = 11 : i64} {
  func.func @autoencoder_kernel(%arg0: i32, %arg1: memref<128x256xf32, #tpu.memory_space<vmem>>, %arg2: memref<256x128xbf16, #tpu.memory_space<vmem>>, %arg3: memref<1x128xf32, #tpu.memory_space<vmem>>, %arg4: memref<128x256xbf16, #tpu.memory_space<vmem>>, %arg5: memref<1x256xf32, #tpu.memory_space<vmem>>, %arg6: memref<128x256xf32, #tpu.memory_space<vmem>>) attributes {dimension_semantics = [#tpu.dimension_semantics<parallel>], iteration_bounds = array<i64: 2>, scalar_prefetch = 0 : i64, scratch_operands = 0 : i64, tpu.core_type = #tpu.core_type<tc>, window_params = [{transform_indices = @transform_0, window_bounds = array<i64: 128, 256>}, {pipeline_mode = #tpu.pipeline_mode<synchronous>, transform_indices = @transform_1, window_bounds = array<i64: 256, 128>}, {pipeline_mode = #tpu.pipeline_mode<synchronous>, transform_indices = @transform_2, window_bounds = array<i64: 1, 128>}, {pipeline_mode = #tpu.pipeline_mode<synchronous>, transform_indices = @transform_3, window_bounds = array<i64: 128, 256>}, {pipeline_mode = #tpu.pipeline_mode<synchronous>, transform_indices = @transform_4, window_bounds = array<i64: 1, 256>}, {transform_indices = @transform_5, window_bounds = array<i64: 128, 256>}]} {
    %c0 = arith.constant 0 : index
    %c0_0 = arith.constant 0 : index
    %0 = vector.load %arg1[%c0, %c0_0] : memref<128x256xf32, #tpu.memory_space<vmem>>, vector<128x256xf32>
    %1 = arith.truncf %0 : vector<128x256xf32> to vector<128x256xbf16>
    %c0_1 = arith.constant 0 : index
    %c0_2 = arith.constant 0 : index
    %2 = vector.load %arg2[%c0_1, %c0_2] : memref<256x128xbf16, #tpu.memory_space<vmem>>, vector<256x128xbf16>
    %cst = arith.constant dense<0.000000e+00> : vector<128x128xf32>
    %3 = tpu.matmul %1, %2, %cst {dimension_numbers = #tpu.dot_dimension_numbers<[1], [0], [0], [1], [0, 0, 1, 1], [], []>} : vector<128x256xbf16>, vector<256x128xbf16>, vector<128x128xf32> -> vector<128x128xf32>
    %c0_3 = arith.constant 0 : index
    %c0_4 = arith.constant 0 : index
    %4 = vector.load %arg3[%c0_3, %c0_4] : memref<1x128xf32, #tpu.memory_space<vmem>>, vector<1x128xf32>
    %5 = vector.broadcast %4 : vector<1x128xf32> to vector<128x128xf32>
    %6 = arith.addf %3, %5 : vector<128x128xf32>
    %7 = arith.negf %6 : vector<128x128xf32>
    %8 = math.exp %7 : vector<128x128xf32>
    %cst_5 = arith.constant 1.000000e+00 : f32
    %9 = vector.broadcast %cst_5 : f32 to vector<128x128xf32>
    %10 = arith.addf %9, %8 : vector<128x128xf32>
    %11 = arith.divf %9, %10 : vector<128x128xf32>
    %12 = arith.truncf %11 : vector<128x128xf32> to vector<128x128xbf16>
    %c0_6 = arith.constant 0 : index
    %c0_7 = arith.constant 0 : index
    %13 = vector.load %arg4[%c0_6, %c0_7] : memref<128x256xbf16, #tpu.memory_space<vmem>>, vector<128x256xbf16>
    %cst_8 = arith.constant dense<0.000000e+00> : vector<128x256xf32>
    %14 = tpu.matmul %12, %13, %cst_8 {dimension_numbers = #tpu.dot_dimension_numbers<[1], [0], [0], [1], [0, 0, 1, 1], [], []>} : vector<128x128xbf16>, vector<128x256xbf16>, vector<128x256xf32> -> vector<128x256xf32>
    %c0_9 = arith.constant 0 : index
    %c0_10 = arith.constant 0 : index
    %15 = vector.load %arg5[%c0_9, %c0_10] : memref<1x256xf32, #tpu.memory_space<vmem>>, vector<1x256xf32>
    %16 = vector.broadcast %15 : vector<1x256xf32> to vector<128x256xf32>
    %17 = arith.addf %14, %16 : vector<128x256xf32>
    %18 = arith.negf %17 : vector<128x256xf32>
    %19 = math.exp %18 : vector<128x256xf32>
    %cst_11 = arith.constant 1.000000e+00 : f32
    %20 = vector.broadcast %cst_11 : f32 to vector<128x256xf32>
    %21 = arith.addf %20, %19 : vector<128x256xf32>
    %22 = arith.divf %20, %21 : vector<128x256xf32>
    %c0_12 = arith.constant 0 : index
    %c0_13 = arith.constant 0 : index
    %23 = vector.load %arg6[%c0_12, %c0_13] : memref<128x256xf32, #tpu.memory_space<vmem>>, vector<128x256xf32>
    tpu.vector_store %arg6[%c0_12, %c0_13], %22 {strides = array<i32>} : memref<128x256xf32, #tpu.memory_space<vmem>>, vector<128x256xf32>,
    return
  }
  func.func @transform_0(%arg0: i32) -> (i32, i32) {
    %c0_i32 = arith.constant 0 : i32
    %c0_i32_0 = arith.constant 0 : i32
    return %arg0, %c0_i32 : i32, i32
  }
  func.func @transform_1(%arg0: i32) -> (i32, i32) {
    %c0_i32 = arith.constant 0 : i32
    %c0_i32_0 = arith.constant 0 : i32
    %c0_i32_1 = arith.constant 0 : i32
    return %c0_i32, %c0_i32_0 : i32, i32
  }
  func.func @transform_2(%arg0: i32) -> (i32, i32) {
    %c0_i32 = arith.constant 0 : i32
    %c0_i32_0 = arith.constant 0 : i32
    %c0_i32_1 = arith.constant 0 : i32
    return %c0_i32, %c0_i32_0 : i32, i32
  }
  func.func @transform_3(%arg0: i32) -> (i32, i32) {
    %c0_i32 = arith.constant 0 : i32
    %c0_i32_0 = arith.constant 0 : i32
    %c0_i32_1 = arith.constant 0 : i32
    return %c0_i32, %c0_i32_0 : i32, i32
  }
  func.func @transform_4(%arg0: i32) -> (i32, i32) {
    %c0_i32 = arith.constant 0 : i32
    %c0_i32_0 = arith.constant 0 : i32
    %c0_i32_1 = arith.constant 0 : i32
    return %c0_i32, %c0_i32_0 : i32, i32
  }
  func.func @transform_5(%arg0: i32) -> (i32, i32) {
    %c0_i32 = arith.constant 0 : i32
    %c0_i32_0 = arith.constant 0 : i32
    return %arg0, %c0_i32 : i32, i32
  }
}

</mosaic_0001>

<bundles_post_ra>
// kernel: autoencoder_forward.1
= control target key start
LH: loop header
LB: loop body
LE: loop exit
PB: predicated region body
PF: predicated region fallthrough
CT: control target
= control target key end

     0   :  { %10 = vsyncpa [#allocation3], 0  ;;  %s2006_s0 = inlined_call_operand.vmem [shape: f32[256,256], index: 0, kind: input, shape index: {}]   ;;  %s2007_s1 = inlined_call_operand.vmem [shape: bf16[256,128], index: 1, kind: input, shape index: {}]   ;;  %s2008_s2 = inlined_call_operand.vmem [shape: f32[1,128], index: 2, kind: input, shape index: {}]   ;;  %s2009_s3 = inlined_call_operand.vmem [shape: bf16[128,256], index: 3, kind: input, shape index: {}]   ;;  %s2010_s4 = inlined_call_operand.vmem [shape: f32[1,256], index: 4, kind: input, shape index: {}]   ;;  %s2011_s5 = inlined_call_operand.hbm [shape: f32[256,256], index: 5, kind: output, shape index: {}]  }
   0x1   :  { %12 = vsyncpa [#allocation3 + $0x1], 0  ;;  %s1668_s18 = smov 0   ;;  %s1670_s19 = smov 0  }
   0x2   :  { %s1672_s20 = smov 0   ;;  %s1674_s21 = smov 0  }
   0x3 LB: > { %s1689_s22 = sadd.s32 4294967295, %s1632_s21   ;;  %s1136_s23 = sadd.s32 4294967294, %s1632_s21   ;;  %s1632_s21 = sphi %s1674_s21, %s2017_s21   ;;  %s1628_s20 = sphi %s1672_s20, %s2016_s20   ;;  %s1624_s19 = sphi %s1670_s19, %s2015_s19   ;;  %s1620_s18 = sphi %s1668_s18, %s2014_s18  }
   0x4   : > { %s1693_s24 = sadd.s32 1, %s1632_s21   ;;  %s135_s25 = sadd.s32 1, %s1628_s20 }
   0x5   : > { %s132_s26 = ssub.s32 %s1632_s21, %s1693_s24  ;;  %p145_p0 = scmp.ne.s32.totalorder %s1628_s20, %s1624_s19 }
   0x6   : > { %p133_p1 = scmp.eq.s32.totalorder %s132_s26, 0  ;;  %p146_p2 = scmp.eq.s32.totalorder %s1689_s22, 1 }
   0x7   : > { %p151_p3 = scmp.ne.s32.totalorder %s1624_s19, %s1620_s18  ;;  %p152_p4 = scmp.eq.s32.totalorder %s1136_s23, 1 }
   0x8   : > { %s1704_s27 = scalar_select %p133_p1, %s1628_s20, %s135_s25  }
   0x9   : > { %p1706_p5 = por %p146_p2, %p145_p0  ;;  %p1710_p6 = por %p152_p4, %p151_p3 }
   0xa   : > { %p1139_p7 = scmp.ge.s32.totalorder %s1632_s21, 1  ;;  %p192_p8 = scmp.lt.s32.totalorder %s1632_s21, 3 }
   0xc   : > { %p193_p9 = pnand %p1139_p7, %p192_p8 }
   0xd   : > { %s1141_s7 = sshll.u32 (!%p193_p9), %s1689_s22, 4  ;;  %s218_s15 = sand.u32 (!%p193_p9), 1, %s1624_s19  }
   0xe   : > { %196 = sbr.rel (%p193_p9) target bundleno = 593 (0x251), region = 40  ;;  %p222_p10 = scmp.lt.s32.totalorder (!%p193_p9), %s1141_s7, 31 }
   0xf   : > { %s1140_s16 = sshll.u32 (!%p193_p9), %s218_s15, 8  ;;  %s1233_s23 = sshll.u32 (!%p193_p9), %s1689_s22, 12 }
  0x10   : > { %s1906_s17 = scalar_lea.vmem (!%p193_p9), [#allocation2], %s1140_s16  ;;  %s1958_s30 = scalar_lea.hbm (!%p193_p9), %s2011_s5, %s1233_s23 }
  0x11   : > { %s1966_s6 = scalar_lea.sflag (!%p193_p9), [#allocation3], %s218_s15  ;;  %s1635_s8 = smov (!%p193_p9), [#allocation2]  }
  0x12   : > { %s1576_s9 = sshll.u32 (!%p193_p9), %s1635_s8, 4  ;;  %s1577_s9 = int_to_ptr.vmem [resolvable:$false] %s1576_s9 }
  0x13   : > { %v1340_v0 = vld [vmem:[%s2007_s1 + $0x78] sm:$0xff]   ;;  %v1342_v2 = vld [vmem:[%s2007_s1 + $0x70] sm:$0xff]   ;;  %v1344_v4 = vld [vmem:[%s2007_s1 + $0x68] sm:$0xff]   ;;  %s2019_s7 = smov (!%p222_p10, %s1141_s7), 31  ;;  %s1578_s10 = scalar_lea.vmem %s1577_s9, 8192 }
  0x14   : > { %v1341_v1 = vld [vmem:[%s2007_s1 + $0x38] sm:$0xff]   ;;  %1234 = vmatprep.subr.bf16.mxu0 %v1340_v0  ;;  %v1343_v3 = vld [vmem:[%s2007_s1 + $0x30] sm:$0xff]   ;;  %v1345_v5 = vld [vmem:[%s2007_s1 + $0x28] sm:$0xff]   ;;  %s1231_s26 = sshll.u32 %s2019_s7, 4 }
  0x15   : > { %1235 = vmatpush3.bf16.msra.mxu0 %v1341_v1  ;;  %v1346_v6 = vld [vmem:[%s2007_s1 + $0x60] sm:$0xff]   ;;  %v1348_v8 = vld [vmem:[%s2007_s1 + $0x58] sm:$0xff]   ;;  %s1747_s12 = scalar_lea.vmem %s2006_s0, %s1231_s26  ;;  %v1350_v10 = vld [vmem:[%s2007_s1 + $0x50] sm:$0xff]  }
  0x16   : > { %1236 = vmatprep.subr.bf16.mxu0 %v1342_v2  ;;  %v1347_v7 = vld [vmem:[%s2007_s1 + $0x20] sm:$0xff]   ;;  %v1349_v9 = vld [vmem:[%s2007_s1 + $0x18] sm:$0xff]   ;;  %v231_v11 = vld [vmem:[%s1747_s12 + $0x8] sm:$0xff] }
  0x17   : > { %v233_v12 = vld [vmem:[%s1747_s12 + $0x18] sm:$0xff]  ;;  %v1351_v14 = vld [vmem:[%s2007_s1 + $0x10] sm:$0xff]   ;;  %v1352_v15 = vld [vmem:[%s2007_s1 + $0x48] sm:$0xff]  }
  0x18   : > { %v263_v13 = vpack.c.bf16 %v233_v12, %v231_v11  ;;  %v1353_v16 = vld [vmem:[%s2007_s1 + $0x8] sm:$0xff]   ;;  %v1354_v17 = vld [vmem:[%s2007_s1 + $0x40] sm:$0xff]   ;;  %v232_v20 = vld [vmem:[%s1747_s12 + $0x10] sm:$0xff] }
  0x19   : > { %1237 = vmatpush3.bf16.msra.mxu0 %v1343_v3  ;;  %v1355_v18 = vld [vmem:[%s2007_s1] sm:$0xff]   ;;  %v235_v21 = vld [vmem:[%s1747_s12 + $0x28] sm:$0xff]  ;;  %v237_v22 = vld [vmem:[%s1747_s12 + $0x38] sm:$0xff] }
  0x1a   : > { %1238 = vmatprep.subr.bf16.mxu0 %v1344_v4  ;;  %445 = vmatprep.mubr.bf16.mxu0 %v263_v13  ;;  %v230_v19 = vld [vmem:[%s1747_s12] sm:$0xff]  ;;  %v265_v24 = vpack.c.bf16 %v237_v22, %v235_v21  ;;  %v236_v26 = vld [vmem:[%s1747_s12 + $0x30] sm:$0xff]  ;;  %v239_v27 = vld [vmem:[%s1747_s12 + $0x48] sm:$0xff] }
  0x1b   : > { %v262_v23 = vpack.c.bf16 %v232_v20, %v230_v19  ;;  %v234_v25 = vld [vmem:[%s1747_s12 + $0x20] sm:$0xff]  ;;  %v241_v28 = vld [vmem:[%s1747_s12 + $0x58] sm:$0xff]  ;;  %v240_v32 = vld [vmem:[%s1747_s12 + $0x50] sm:$0xff] }
  0x1c   : > { %v264_v29 = vpack.c.bf16 %v236_v26, %v234_v25  ;;  %v267_v30 = vpack.c.bf16 %v241_v28, %v239_v27  ;;  %v238_v31 = vld [vmem:[%s1747_s12 + $0x40] sm:$0xff]  ;;  %v243_v33 = vld [vmem:[%s1747_s12 + $0x68] sm:$0xff]  ;;  %v245_v34 = vld [vmem:[%s1747_s12 + $0x78] sm:$0xff] }
  0x1d   : > { %1239 = vmatpush3.bf16.msra.mxu0 %v1345_v5  ;;  %v266_v35 = vpack.c.bf16 %v240_v32, %v238_v31  ;;  %v269_v36 = vpack.c.bf16 %v245_v34, %v243_v33  ;;  %v242_v37 = vld [vmem:[%s1747_s12 + $0x60] sm:$0xff]  ;;  %v244_v38 = vld [vmem:[%s1747_s12 + $0x70] sm:$0xff]  ;;  %v247_v39 = vld [vmem:[%s1747_s12 + $0x88] sm:$0xff] }
  0x1e   : > { %1240 = vmatprep.subr.bf16.mxu0 %v1346_v6  ;;  %v249_v40 = vld [vmem:[%s1747_s12 + $0x98] sm:$0xff]  ;;  %v268_v41 = vpack.c.bf16 %v244_v38, %v242_v37  ;;  %v246_v43 = vld [vmem:[%s1747_s12 + $0x80] sm:$0xff]  ;;  %v248_v44 = vld [vmem:[%s1747_s12 + $0x90] sm:$0xff] }
  0x1f   : > { %v271_v42 = vpack.c.bf16 %v249_v40, %v247_v39  ;;  %v251_v45 = vld [vmem:[%s1747_s12 + $0xa8] sm:$0xff]  ;;  %v253_v46 = vld [vmem:[%s1747_s12 + $0xb8] sm:$0xff]  ;;  %v270_v47 = vpack.c.bf16 %v248_v44, %v246_v43  ;;  %v250_v49 = vld [vmem:[%s1747_s12 + $0xa0] sm:$0xff] }
  0x20   : > { %v273_v48 = vpack.c.bf16 %v253_v46, %v251_v45  ;;  %v252_v50 = vld [vmem:[%s1747_s12 + $0xb0] sm:$0xff]  ;;  %v255_v51 = vld [vmem:[%s1747_s12 + $0xc8] sm:$0xff]  ;;  %v257_v52 = vld [vmem:[%s1747_s12 + $0xd8] sm:$0xff] }
  0x21   : > { %1241 = vmatpush3.bf16.msra.mxu0 %v1347_v7  ;;  %v272_v53 = vpack.c.bf16 %v252_v50, %v250_v49  ;;  %v275_v54 = vpack.c.bf16 %v257_v52, %v255_v51  ;;  %v254_v55 = vld [vmem:[%s1747_s12 + $0xc0] sm:$0xff]  ;;  %v256_v56 = vld [vmem:[%s1747_s12 + $0xd0] sm:$0xff]  ;;  %v259_v57 = vld [vmem:[%s1747_s12 + $0xe8] sm:$0xff] }
  0x22   : > { %1242 = vmatprep.subr.bf16.mxu0 %v1348_v8  ;;  %v261_v58 = vld [vmem:[%s1747_s12 + $0xf8] sm:$0xff]  ;;  %v274_v59 = vpack.c.bf16 %v256_v56, %v254_v55  ;;  %v258_v61 = vld [vmem:[%s1747_s12 + $0xe0] sm:$0xff]  ;;  %v260_v62 = vld [vmem:[%s1747_s12 + $0xf0] sm:$0xff]  ;;  %s1074_s12 = sshll.u32 %s1906_s17, 4  ;;  %s1960_s12 = int_to_ptr.vmem [resolvable:$true] %s1074_s12 }
  0x23   : > { %v277_v60 = vpack.c.bf16 %v261_v58, %v259_v57  ;;  %v276_v63 = vpack.c.bf16 %v260_v62, %v258_v61  ;;  %v1356_v0 = vld [vmem:[%s2009_s3 + $0x74] ss:$8 sps:$4 sm:$0xff]   ;;  %v1358_v1 = vld [vmem:[%s2009_s3 + $0x70] ss:$8 sps:$4 sm:$0xff]   ;;  %v1359_v2 = vld [vmem:[%s2009_s3 + $0x64] ss:$8 sps:$4 sm:$0xff]   ;;  %p1579_p0 = scmp.lt.s32.totalorder %s1960_s12, %s1577_s9 }
  0x24   : > { %722 = vmatprep.subr.bf16.mxu1 %v1356_v0  ;;  %v1361_v3 = vld [vmem:[%s2009_s3 + $0x60] ss:$8 sps:$4 sm:$0xff]   ;;  %v1362_v4 = vld [vmem:[%s2009_s3 + $0x54] ss:$8 sps:$4 sm:$0xff]   ;;  %v1364_v5 = vld [vmem:[%s2009_s3 + $0x50] ss:$8 sps:$4 sm:$0xff]  }
  0x25   : > { %1243 = vmatpush3.bf16.msra.mxu0 %v1349_v9  ;;  %723 = vmatpush1.bf16.msra.mxu1 %v1358_v1  ;;  %v1365_v6 = vld [vmem:[%s2009_s3 + $0x44] ss:$8 sps:$4 sm:$0xff]   ;;  %v1367_v7 = vld [vmem:[%s2009_s3 + $0x40] ss:$8 sps:$4 sm:$0xff]   ;;  %v1368_v8 = vld [vmem:[%s2009_s3 + $0x34] ss:$8 sps:$4 sm:$0xff]  }
  0x26   : > { %1244 = vmatprep.subr.bf16.mxu0 %v1350_v10  ;;  %724 = vmatprep.subr.bf16.mxu1 %v1359_v2  ;;  %v1370_v9 = vld [vmem:[%s2009_s3 + $0x30] ss:$8 sps:$4 sm:$0xff]   ;;  %v1371_v10 = vld [vmem:[%s2009_s3 + $0x24] ss:$8 sps:$4 sm:$0xff]   ;;  %v1373_v11 = vld [vmem:[%s2009_s3 + $0x20] ss:$8 sps:$4 sm:$0xff]  }
  0x27   : > { %v1374_v12 = vld [vmem:[%s2009_s3 + $0x14] ss:$8 sps:$4 sm:$0xff]   ;;  %v1376_v13 = vld [vmem:[%s2009_s3 + $0x10] ss:$8 sps:$4 sm:$0xff]   ;;  %s1572_s22 = scalar_lea.vmem %s1960_s12, 4096 }
  0x28   : > { %p1573_p11 = scmp.ne.s32.totalorder %s1960_s12, %s1572_s22  ;;  %p1580_p1 = scmp.lt.s32.totalorder %s1578_s10, %s1572_s22 }
  0x29   : > { %1245 = vmatpush3.bf16.msra.mxu0 %v1351_v14  ;;  %725 = vmatpush1.bf16.msra.mxu1 %v1361_v3  ;;  %v1377_v14 = vld [vmem:[%s2009_s3 + $0x4] ss:$8 sps:$4 sm:$0xff]  }
  0x2a   : > { %1246 = vmatprep.subr.bf16.mxu0 %v1352_v15  ;;  %726 = vmatprep.subr.bf16.mxu1 %v1362_v4  ;;  %v1379_v15 = vld [vmem:[%s2009_s3] ss:$8 sps:$4 sm:$0xff]   ;;  %p1574_p12 = pnand %p1573_p11, %p1706_p5  ;;  %p1581_p2 = por %p1580_p1, %p1579_p0 }
  0x2c   : > { %p1575_p13 = pneg %p1574_p12 }
  0x2d   : > { %1247 = vmatpush3.bf16.msra.mxu0 %v1353_v16  ;;  %727 = vmatpush1.bf16.msra.mxu1 %v1364_v5  ;;  %v1634_v16 = vmov 0  }
  0x2e   : > { %1248 = vmatprep.subr.bf16.mxu0 %v1354_v17  ;;  %728 = vmatprep.subr.bf16.mxu1 %v1365_v6  ;;  %p1582_p3 = pnand %p1581_p2, %p1575_p13 }
  0x2f   : > { %754 = vmatprep.mubr.bf16.mxu1 %v1634_v16 }
  0x31   : > { %1249 = vmatpush3.bf16.msra.mxu0 %v1355_v18  ;;  %729 = vmatpush1.bf16.msra.mxu1 %v1367_v7  ;;  %v1854_v18 = vld [vmem:[%s2008_s2] ss:$0 sm:$0xff] }
  0x32   : > { %730 = vmatprep.subr.bf16.mxu1 %v1368_v8 }
  0x34   : > { %446 = vmatmul.mubr.bf16.vlgmr.msra.gmra.mxu0 %v262_v23 }
  0x35   : > { %453 = vmatprep.mubr.bf16.mxu0 %v265_v24  ;;  %731 = vmatpush1.bf16.msra.mxu1 %v1370_v9 }
  0x36   : > { %732 = vmatprep.subr.bf16.mxu1 %v1371_v10 }
  0x39   : > { %733 = vmatpush1.bf16.msra.mxu1 %v1373_v11 }
  0x3a   : > { %734 = vmatprep.subr.bf16.mxu1 %v1374_v12 }
  0x3c   : > { %454 = vmatmul.mubr.bf16.gmra.mxu0 %v264_v29 }
  0x3d   : > { %461 = vmatprep.mubr.bf16.mxu0 %v267_v30  ;;  %735 = vmatpush1.bf16.msra.mxu1 %v1376_v13 }
  0x3e   : > { %736 = vmatprep.subr.bf16.mxu1 %v1377_v14 }
  0x41   : > { %737 = vmatpush1.bf16.msra.mxu1 %v1379_v15 }
  0x44   : > { %462 = vmatmul.mubr.bf16.gmra.mxu0 %v266_v35 }
  0x45   : > { %469 = vmatprep.mubr.bf16.mxu0 %v269_v36 }
  0x4c   : > { %470 = vmatmul.mubr.bf16.gmra.mxu0 %v268_v41 }
  0x4d   : > { %477 = vmatprep.mubr.bf16.mxu0 %v271_v42 }
  0x54   : > { %478 = vmatmul.mubr.bf16.gmra.mxu0 %v270_v47 }
  0x55   : > { %485 = vmatprep.mubr.bf16.mxu0 %v273_v48 }
  0x5c   : > { %486 = vmatmul.mubr.bf16.gmra.mxu0 %v272_v53 }
  0x5d   : > { %493 = vmatprep.mubr.bf16.mxu0 %v275_v54 }
  0x64   : > { %494 = vmatmul.mubr.bf16.gmra.mxu0 %v274_v59 }
  0x65   : > { %501 = vmatprep.mubr.bf16.mxu0 %v277_v60 }
  0x6c   : > { %502 = vmatmul.mubr.bf16.gmra.mxu0 %v276_v63 }
  0xf4   : > { %v1250_v17 = vpop.f32.mrf.mxu0 }
  0xf6   : > { %v1251_v19 = vpop.f32.mrf.mxu0 }
  0xf7   : > { %v1252_v20 = vadd.f32 %v1251_v19, %v1250_v17 }
  0xf8   : > { %v1253_v21 = vpop.f32.mrf.mxu0 }
  0xf9   : > { %v448_v22 = vadd.f32 %v1252_v20, %v1854_v18 }
  0xfa   : > { %v1254_v23 = vpop.f32.mrf.mxu0 }
  0xfb   : > { %v1161_v24 = vmul.f32 -1.442695, %v448_v22  ;;  %v1255_v25 = vadd.f32 %v1254_v23, %v1253_v21 }
  0xfc   : > { %v1256_v26 = vpop.f32.mrf.mxu0 }
  0xfd   : > { %1380 = vpow2.f32 %v1161_v24  ;;  %v451_v27 = vadd.f32 %v1255_v25, %v1854_v18 }
  0xfe   : > { %v1257_v28 = vpop.f32.mrf.mxu0 }
  0xff   : > { %v1162_v29 = vmul.f32 -1.442695, %v451_v27  ;;  %v1258_v30 = vadd.f32 %v1257_v28, %v1256_v26 }
 0x100   : > { %v1259_v31 = vpop.f32.mrf.mxu0 }
 0x101   : > { %1382 = vpow2.f32 %v1162_v29  ;;  %v456_v32 = vadd.f32 %v1258_v30, %v1854_v18 }
 0x102   : > { %v1260_v33 = vpop.f32.mrf.mxu0 }
 0x103   : > { %v1163_v34 = vmul.f32 -1.442695, %v456_v32  ;;  %v1261_v35 = vadd.f32 %v1260_v33, %v1259_v31 }
 0x104   : > { %v1262_v36 = vpop.f32.mrf.mxu0 }
 0x105   : > { %1384 = vpow2.f32 %v1163_v34  ;;  %v459_v37 = vadd.f32 %v1261_v35, %v1854_v18 }
 0x106   : > { %v1263_v38 = vpop.f32.mrf.mxu0 }
 0x107   : > { %v1164_v39 = vmul.f32 -1.442695, %v459_v37  ;;  %v1264_v40 = vadd.f32 %v1263_v38, %v1262_v36 }
 0x108   : > { %v1265_v41 = vpop.f32.mrf.mxu0 }
 0x109   : > { %1386 = vpow2.f32 %v1164_v39  ;;  %v464_v42 = vadd.f32 %v1264_v40, %v1854_v18 }
 0x10a   : > { %v1381_v43 = vpop.eup %1380  ;;  %v1266_v44 = vpop.f32.mrf.mxu0 }
 0x10b   : > { %v1165_v45 = vmul.f32 -1.442695, %v464_v42  ;;  %v1267_v46 = vadd.f32 %v1266_v44, %v1265_v41  ;;  %v558_v47 = vadd.f32 1.0, %v1381_v43 }
 0x10c   : > { %v1268_v48 = vpop.f32.mrf.mxu0 }
 0x10d   : > { %v467_v49 = vadd.f32 %v1267_v46, %v1854_v18  ;;  %1388 = vpow2.f32 %v1165_v45 }
 0x10e   : > { %v1383_v50 = vpop.eup %1382  ;;  %v1269_v51 = vpop.f32.mrf.mxu0  ;;  %1390 = vrcp.f32 %v558_v47 }
 0x10f   : > { %v559_v52 = vadd.f32 1.0, %v1383_v50  ;;  %v1166_v53 = vmul.f32 -1.442695, %v467_v49  ;;  %v1270_v54 = vadd.f32 %v1269_v51, %v1268_v48 }
 0x110   : > { %v1271_v55 = vpop.f32.mrf.mxu0 }
 0x111   : > { %1392 = vrcp.f32 %v559_v52  ;;  %v472_v56 = vadd.f32 %v1270_v54, %v1854_v18 }
 0x112   : > { %v1385_v57 = vpop.eup %1384  ;;  %1394 = vpow2.f32 %v1166_v53  ;;  %v1272_v58 = vpop.f32.mrf.mxu0 }
 0x113   : > { %v1167_v59 = vmul.f32 -1.442695, %v472_v56  ;;  %v1273_v60 = vadd.f32 %v1272_v58, %v1271_v55  ;;  %v560_v61 = vadd.f32 1.0, %v1385_v57 }
 0x114   : > { %v1274_v62 = vpop.f32.mrf.mxu0 }
 0x115   : > { %v475_v63 = vadd.f32 %v1273_v60, %v1854_v18  ;;  %1396 = vpow2.f32 %v1167_v59 }
 0x116   : > { %v1387_v0 = vpop.eup %1386  ;;  %v1275_v1 = vpop.f32.mrf.mxu0  ;;  %1398 = vrcp.f32 %v560_v61 }
 0x117   : > { %v561_v2 = vadd.f32 1.0, %v1387_v0  ;;  %v1168_v3 = vmul.f32 -1.442695, %v475_v63  ;;  %v1276_v4 = vadd.f32 %v1275_v1, %v1274_v62 }
 0x118   : > { %v1277_v5 = vpop.f32.mrf.mxu0 }
 0x119   : > { %1400 = vrcp.f32 %v561_v2  ;;  %v480_v6 = vadd.f32 %v1276_v4, %v1854_v18 }
 0x11a   : > { %1402 = vpow2.f32 %v1168_v3  ;;  %v1278_v7 = vpop.f32.mrf.mxu0  ;;  %v1389_v8 = vpop.eup %1388 }
 0x11b   : > { %v1169_v9 = vmul.f32 -1.442695, %v480_v6  ;;  %v1279_v10 = vadd.f32 %v1278_v7, %v1277_v5  ;;  %v562_v11 = vadd.f32 1.0, %v1389_v8  ;;  %v1391_v13 = vpop.eup %1390 }
 0x11c   : > { %v1280_v12 = vpop.f32.mrf.mxu0 }
 0x11d   : > { %1404 = vpow2.f32 %v1169_v9  ;;  %v483_v14 = vadd.f32 %v1279_v10, %v1854_v18 }
 0x11e   : > { %v1393_v15 = vpop.eup %1392  ;;  %v1281_v17 = vpop.f32.mrf.mxu0  ;;  %1406 = vrcp.f32 %v562_v11 }
 0x11f   : > { %v1395_v19 = vpop.eup %1394  ;;  %v1170_v20 = vmul.f32 -1.442695, %v483_v14  ;;  %v1282_v21 = vadd.f32 %v1281_v17, %v1280_v12  ;;  %v606_v22 = vpack.c.bf16 %v1393_v15, %v1391_v13 }
 0x120   : > { %v563_v23 = vadd.f32 1.0, %v1395_v19  ;;  %v1283_v24 = vpop.f32.mrf.mxu0 }
 0x121   : > { %1408 = vpow2.f32 %v1170_v20  ;;  %v488_v25 = vadd.f32 %v1282_v21, %v1854_v18  ;;  %755 = vmatmul.mubr.bf16.vlgmr.msra.gmra.mxu1 %v606_v22 }
 0x122   : > { %1410 = vrcp.f32 %v563_v23  ;;  %v1284_v26 = vpop.f32.mrf.mxu0  ;;  %764 = vmatprep.mubr.bf16.mxu1 %v1634_v16  ;;  %v1397_v27 = vpop.eup %1396 }
 0x123   : > { %v1171_v28 = vmul.f32 -1.442695, %v488_v25  ;;  %v1285_v29 = vadd.f32 %v1284_v26, %v1283_v24  ;;  %v564_v30 = vadd.f32 1.0, %v1397_v27  ;;  %v1399_v32 = vpop.eup %1398 }
 0x124   : > { %v1286_v31 = vpop.f32.mrf.mxu0 }
 0x125   : > { %1412 = vpow2.f32 %v1171_v28  ;;  %v491_v33 = vadd.f32 %v1285_v29, %v1854_v18  ;;  %v632_v29 = vlaneseq }
 0x126   : > { %v1401_v34 = vpop.eup %1400  ;;  %v1287_v35 = vpop.f32.mrf.mxu0  ;;  %1414 = vrcp.f32 %v564_v30 }
 0x127   : > { %v1403_v36 = vpop.eup %1402  ;;  %v1172_v37 = vmul.f32 -1.442695, %v491_v33  ;;  %v1288_v38 = vadd.f32 %v1287_v35, %v1286_v31  ;;  %v607_v39 = vpack.c.bf16 %v1401_v34, %v1399_v32  ;;  %v633_v30 = vshrl.u32 %v632_v29, 7  ;;  %v630_v32 = vld [vmem:[%s2010_s4] sm:$0x3] }
 0x128   : > { %v565_v40 = vadd.f32 1.0, %v1403_v36  ;;  %v1289_v41 = vpop.f32.mrf.mxu0 }
 0x129   : > { %1416 = vpow2.f32 %v1172_v37  ;;  %v496_v42 = vadd.f32 %v1288_v38, %v1854_v18  ;;  %765 = vmatmul.mubr.bf16.gmra.mxu1 %v607_v39  ;;  %v634_v31 = vsub.s32 0, %v633_v30  ;;  %v638_v33 = vsub.s32 1, %v633_v30 }
 0x12a   : > { %v1405_v43 = vpop.eup %1404  ;;  %1418 = vrcp.f32 %v565_v40  ;;  %v1290_v44 = vpop.f32.mrf.mxu0  ;;  %774 = vmatprep.mubr.bf16.mxu1 %v1634_v16 }
 0x12b   : > { %v1173_v45 = vmul.f32 -1.442695, %v496_v42  ;;  %v1291_v46 = vadd.f32 %v1290_v44, %v1289_v41  ;;  %v566_v47 = vadd.f32 1.0, %v1405_v43  ;;  %v1407_v49 = vpop.eup %1406  ;;  %v1882_v34 = vrot.slane %v630_v32, %v634_v31 }
 0x12c   : > { %v1292_v48 = vpop.f32.mrf.mxu0  ;;  %v1884_v35 = vrot.slane %v630_v32, %v638_v33 }
 0x12d   : > { %v499_v50 = vadd.f32 %v1291_v46, %v1854_v18  ;;  %1420 = vpow2.f32 %v1173_v45 }
 0x12e   : > { %v1409_v51 = vpop.eup %1408  ;;  %v1293_v52 = vpop.f32.mrf.mxu0  ;;  %1422 = vrcp.f32 %v566_v47 }
 0x12f   : > { %v1411_v53 = vpop.eup %1410  ;;  %v567_v54 = vadd.f32 1.0, %v1409_v51  ;;  %v1174_v55 = vmul.f32 -1.442695, %v499_v50  ;;  %v1294_v56 = vadd.f32 %v1293_v52, %v1292_v48 }
 0x130   : > { %v1295_v57 = vpop.f32.mrf.mxu0  ;;  %v608_v58 = vpack.c.bf16 %v1411_v53, %v1407_v49 }
 0x131   : > { %1424 = vrcp.f32 %v567_v54  ;;  %v504_v59 = vadd.f32 %v1294_v56, %v1854_v18 }
 0x132   : > { %v1413_v60 = vpop.eup %1412  ;;  %1426 = vpow2.f32 %v1174_v55  ;;  %775 = vmatmul.mubr.bf16.gmra.mxu1 %v608_v58  ;;  %v1296_v61 = vpop.f32.mrf.mxu0 }
 0x133   : > { %v1175_v62 = vmul.f32 -1.442695, %v504_v59  ;;  %v1297_v63 = vadd.f32 %v1296_v61, %v1295_v57  ;;  %784 = vmatprep.mubr.bf16.mxu1 %v1634_v16  ;;  %v568_v0 = vadd.f32 1.0, %v1413_v60  ;;  %v1415_v1 = vpop.eup %1414 }
 0x135   : > { %v507_v2 = vadd.f32 %v1297_v63, %v1854_v18  ;;  %1428 = vpow2.f32 %v1175_v62 }
 0x136   : > { %v1417_v3 = vpop.eup %1416  ;;  %1430 = vrcp.f32 %v568_v0 }
 0x137   : > { %v1419_v4 = vpop.eup %1418  ;;  %v569_v5 = vadd.f32 1.0, %v1417_v3  ;;  %v1176_v6 = vmul.f32 -1.442695, %v507_v2 }
 0x138   : > { %v609_v7 = vpack.c.bf16 %v1419_v4, %v1415_v1 }
 0x139   : > { %1432 = vrcp.f32 %v569_v5 }
 0x13a   : > { %1434 = vpow2.f32 %v1176_v6  ;;  %785 = vmatmul.mubr.bf16.gmra.mxu1 %v609_v7  ;;  %v1421_v8 = vpop.eup %1420 }
 0x13b   : > { %794 = vmatprep.mubr.bf16.mxu1 %v1634_v16  ;;  %v1423_v9 = vpop.eup %1422  ;;  %v570_v10 = vadd.f32 1.0, %v1421_v8 }
 0x13d   : > { %1436 = vrcp.f32 %v570_v10 }
 0x13e   : > { %v1425_v11 = vpop.eup %1424 }
 0x13f   : > { %v1427_v12 = vpop.eup %1426  ;;  %v610_v13 = vpack.c.bf16 %v1425_v11, %v1423_v9 }
 0x140   : > { %v571_v14 = vadd.f32 1.0, %v1427_v12 }
 0x142   : > { %1438 = vrcp.f32 %v571_v14  ;;  %795 = vmatmul.mubr.bf16.gmra.mxu1 %v610_v13  ;;  %v1429_v18 = vpop.eup %1428 }
 0x143   : > { %804 = vmatprep.mubr.bf16.mxu1 %v1634_v16  ;;  %v1431_v15 = vpop.eup %1430  ;;  %v572_v17 = vadd.f32 1.0, %v1429_v18 }
 0x145   : > { %1440 = vrcp.f32 %v572_v17 }
 0x146   : > { %v1433_v19 = vpop.eup %1432 }
 0x147   : > { %v1435_v20 = vpop.eup %1434  ;;  %v611_v21 = vpack.c.bf16 %v1433_v19, %v1431_v15 }
 0x148   : > { %v573_v22 = vadd.f32 1.0, %v1435_v20 }
 0x14a   : > { %1442 = vrcp.f32 %v573_v22  ;;  %805 = vmatmul.mubr.bf16.gmra.mxu1 %v611_v21  ;;  %v1437_v23 = vpop.eup %1436 }
 0x14b   : > { %814 = vmatprep.mubr.bf16.mxu1 %v1634_v16 }
 0x14f   : > { %v1439_v24 = vpop.eup %1438 }
 0x150   : > { %v612_v25 = vpack.c.bf16 %v1439_v24, %v1437_v23 }
 0x152   : > { %815 = vmatmul.mubr.bf16.gmra.mxu1 %v612_v25  ;;  %v1441_v26 = vpop.eup %1440 }
 0x153   : > { %824 = vmatprep.mubr.bf16.mxu1 %v1634_v16 }
 0x157   : > { %v1443_v27 = vpop.eup %1442 }
 0x158   : > { %v613_v28 = vpack.c.bf16 %v1443_v27, %v1441_v26 }
 0x15a   : > { %825 = vmatmul.mubr.bf16.gmra.mxu1 %v613_v28 }
 0x1e1   : > { %v756_v36 = vpop.f32.mrf.mxu1 }
 0x1e2   : > { %v757_v37 = vadd.f32 %v756_v36, %v1882_v34 }
 0x1e3   : > { %v758_v16 = vpop.f32.mrf.mxu1 }
 0x1e4   : > { %v1193_v38 = vmul.f32 -1.442695, %v757_v37  ;;  %v759_v39 = vadd.f32 %v758_v16, %v1884_v35 }
 0x1e5   : > { %v760_v40 = vpop.f32.mrf.mxu1 }
 0x1e6   : > { %1444 = vpow2.f32 %v1193_v38  ;;  %v1194_v41 = vmul.f32 -1.442695, %v759_v39  ;;  %v761_v42 = vadd.f32 %v760_v40, %v1882_v34 }
 0x1e7   : > { %v762_v43 = vpop.f32.mrf.mxu1 }
 0x1e8   : > { %1446 = vpow2.f32 %v1194_v41  ;;  %v1195_v44 = vmul.f32 -1.442695, %v761_v42  ;;  %v763_v45 = vadd.f32 %v762_v43, %v1884_v35 }
 0x1e9   : > { %v766_v46 = vpop.f32.mrf.mxu1 }
 0x1ea   : > { %1448 = vpow2.f32 %v1195_v44  ;;  %v1196_v47 = vmul.f32 -1.442695, %v763_v45  ;;  %v767_v48 = vadd.f32 %v766_v46, %v1882_v34 }
 0x1eb   : > { %v768_v49 = vpop.f32.mrf.mxu1 }
 0x1ec   : > { %1450 = vpow2.f32 %v1196_v47  ;;  %v1197_v50 = vmul.f32 -1.442695, %v767_v48  ;;  %v769_v51 = vadd.f32 %v768_v49, %v1884_v35 }
 0x1ed   : > { %v770_v52 = vpop.f32.mrf.mxu1 }
 0x1ee   : > { %1452 = vpow2.f32 %v1197_v50  ;;  %v1198_v53 = vmul.f32 -1.442695, %v769_v51  ;;  %v771_v54 = vadd.f32 %v770_v52, %v1882_v34 }
 0x1ef   : > { %v772_v55 = vpop.f32.mrf.mxu1 }
 0x1f0   : > { %1454 = vpow2.f32 %v1198_v53  ;;  %v1199_v56 = vmul.f32 -1.442695, %v771_v54  ;;  %v773_v57 = vadd.f32 %v772_v55, %v1884_v35 }
 0x1f2   : > { %1456 = vpow2.f32 %v1199_v56  ;;  %v1200_v58 = vmul.f32 -1.442695, %v773_v57  ;;  %v776_v59 = vpop.f32.mrf.mxu1 }
 0x1f3   : > { %v1445_v60 = vpop.eup %1444  ;;  %v777_v61 = vadd.f32 %v776_v59, %v1882_v34 }
 0x1f4   : > { %v931_v62 = vadd.f32 1.0, %v1445_v60  ;;  %1458 = vpow2.f32 %v1200_v58  ;;  %v778_v63 = vpop.f32.mrf.mxu1 }
 0x1f5   : > { %v1447_v0 = vpop.eup %1446  ;;  %v1201_v1 = vmul.f32 -1.442695, %v777_v61  ;;  %v779_v2 = vadd.f32 %v778_v63, %v1884_v35 }
 0x1f6   : > { %1460 = vrcp.f32 %v931_v62  ;;  %v932_v3 = vadd.f32 1.0, %v1447_v0  ;;  %v780_v4 = vpop.f32.mrf.mxu1 }
 0x1f7   : > { %v1449_v5 = vpop.eup %1448  ;;  %1462 = vpow2.f32 %v1201_v1  ;;  %v1202_v6 = vmul.f32 -1.442695, %v779_v2  ;;  %v781_v7 = vadd.f32 %v780_v4, %v1882_v34 }
 0x1f8   : > { %1464 = vrcp.f32 %v932_v3  ;;  %v933_v8 = vadd.f32 1.0, %v1449_v5  ;;  %v782_v9 = vpop.f32.mrf.mxu1 }
 0x1f9   : > { %v1451_v10 = vpop.eup %1450  ;;  %1466 = vpow2.f32 %v1202_v6  ;;  %v1203_v11 = vmul.f32 -1.442695, %v781_v7  ;;  %v783_v12 = vadd.f32 %v782_v9, %v1884_v35 }
 0x1fa   : > { %1468 = vrcp.f32 %v933_v8  ;;  %v934_v13 = vadd.f32 1.0, %v1451_v10  ;;  %v786_v14 = vpop.f32.mrf.mxu1 }
 0x1fb   : > { %v1453_v18 = vpop.eup %1452  ;;  %1470 = vpow2.f32 %v1203_v11  ;;  %v1204_v15 = vmul.f32 -1.442695, %v783_v12  ;;  %v787_v17 = vadd.f32 %v786_v14, %v1882_v34 }
 0x1fc   : > { %1472 = vrcp.f32 %v934_v13  ;;  %v935_v19 = vadd.f32 1.0, %v1453_v18  ;;  %v788_v20 = vpop.f32.mrf.mxu1 }
 0x1fd   : > { %v1455_v21 = vpop.eup %1454  ;;  %1474 = vpow2.f32 %v1204_v15  ;;  %v1205_v22 = vmul.f32 -1.442695, %v787_v17  ;;  %v789_v23 = vadd.f32 %v788_v20, %v1884_v35 }
 0x1fe   : > { %1476 = vrcp.f32 %v935_v19  ;;  %v936_v24 = vadd.f32 1.0, %v1455_v21  ;;  %v790_v25 = vpop.f32.mrf.mxu1 }
 0x1ff   : > { %v1457_v26 = vpop.eup %1456  ;;  %1478 = vpow2.f32 %v1205_v22  ;;  %v1206_v27 = vmul.f32 -1.442695, %v789_v23  ;;  %v791_v28 = vadd.f32 %v790_v25, %v1882_v34 }
 0x200   : > { %1480 = vrcp.f32 %v936_v24  ;;  %v937_v29 = vadd.f32 1.0, %v1457_v26  ;;  %v792_v30 = vpop.f32.mrf.mxu1 }
 0x201   : > { %v1459_v31 = vpop.eup %1458  ;;  %1482 = vpow2.f32 %v1206_v27  ;;  %v1207_v32 = vmul.f32 -1.442695, %v791_v28  ;;  %v793_v33 = vadd.f32 %v792_v30, %v1884_v35 }
 0x202   : > { %1484 = vrcp.f32 %v937_v29  ;;  %v938_v36 = vadd.f32 1.0, %v1459_v31  ;;  %v796_v37 = vpop.f32.mrf.mxu1 }
 0x203   : > { %v1461_v16 = vpop.eup %1460  ;;  %1486 = vpow2.f32 %v1207_v32  ;;  %v1208_v38 = vmul.f32 -1.442695, %v793_v33  ;;  %v797_v39 = vadd.f32 %v796_v37, %v1882_v34 }
 0x204   : > { %v1463_v40 = vpop.eup %1462  ;;  %1027 = vst [vmem:[%s1906_s17] sm:$0xff] %v1461_v16  ;;  %1488 = vrcp.f32 %v938_v36  ;;  %v798_v41 = vpop.f32.mrf.mxu1 }
 0x205   : > { %v1465_v42 = vpop.eup %1464  ;;  %v939_v43 = vadd.f32 1.0, %v1463_v40  ;;  %1490 = vpow2.f32 %v1208_v38  ;;  %v1209_v44 = vmul.f32 -1.442695, %v797_v39  ;;  %v799_v45 = vadd.f32 %v798_v41, %v1884_v35 }
 0x206   : > { %v1467_v46 = vpop.eup %1466  ;;  %1028 = vst [vmem:[%s1906_s17 + $0x8] sm:$0xff] %v1465_v42  ;;  %v800_v47 = vpop.f32.mrf.mxu1 }
 0x207   : > { %v1469_v48 = vpop.eup %1468  ;;  %1492 = vrcp.f32 %v939_v43  ;;  %v940_v49 = vadd.f32 1.0, %v1467_v46  ;;  %v1210_v50 = vmul.f32 -1.442695, %v799_v45  ;;  %v801_v51 = vadd.f32 %v800_v47, %v1882_v34 }
 0x208   : > { %v1471_v52 = vpop.eup %1470  ;;  %1029 = vst [vmem:[%s1906_s17 + $0x10] sm:$0xff] %v1469_v48  ;;  %1494 = vpow2.f32 %v1209_v44  ;;  %v802_v53 = vpop.f32.mrf.mxu1 }
 0x209   : > { %v1473_v54 = vpop.eup %1472  ;;  %1496 = vrcp.f32 %v940_v49  ;;  %v941_v55 = vadd.f32 1.0, %v1471_v52  ;;  %v1211_v56 = vmul.f32 -1.442695, %v801_v51  ;;  %v803_v57 = vadd.f32 %v802_v53, %v1884_v35 }
 0x20a   : > { %v1475_v58 = vpop.eup %1474  ;;  %1030 = vst [vmem:[%s1906_s17 + $0x18] sm:$0xff] %v1473_v54  ;;  %1498 = vpow2.f32 %v1210_v50  ;;  %v806_v59 = vpop.f32.mrf.mxu1 }
 0x20b   : > { %v1477_v60 = vpop.eup %1476  ;;  %1500 = vrcp.f32 %v941_v55  ;;  %v942_v61 = vadd.f32 1.0, %v1475_v58  ;;  %v1212_v62 = vmul.f32 -1.442695, %v803_v57  ;;  %v807_v63 = vadd.f32 %v806_v59, %v1882_v34 }
 0x20c   : > { %v1479_v0 = vpop.eup %1478  ;;  %1031 = vst [vmem:[%s1906_s17 + $0x20] sm:$0xff] %v1477_v60  ;;  %1502 = vpow2.f32 %v1211_v56  ;;  %v808_v1 = vpop.f32.mrf.mxu1 }
 0x20d   : > { %v1481_v2 = vpop.eup %1480  ;;  %1504 = vrcp.f32 %v942_v61  ;;  %v943_v3 = vadd.f32 1.0, %v1479_v0  ;;  %v1213_v4 = vmul.f32 -1.442695, %v807_v63  ;;  %v809_v5 = vadd.f32 %v808_v1, %v1884_v35 }
 0x20e   : > { %v1483_v6 = vpop.eup %1482  ;;  %1032 = vst [vmem:[%s1906_s17 + $0x28] sm:$0xff] %v1481_v2  ;;  %1506 = vpow2.f32 %v1212_v62  ;;  %v810_v7 = vpop.f32.mrf.mxu1 }
 0x20f   : > { %v1485_v8 = vpop.eup %1484  ;;  %1508 = vrcp.f32 %v943_v3  ;;  %v944_v9 = vadd.f32 1.0, %v1483_v6  ;;  %v1214_v10 = vmul.f32 -1.442695, %v809_v5  ;;  %v811_v11 = vadd.f32 %v810_v7, %v1882_v34 }
 0x210   : > { %v1487_v12 = vpop.eup %1486  ;;  %1033 = vst [vmem:[%s1906_s17 + $0x30] sm:$0xff] %v1485_v8  ;;  %1510 = vpow2.f32 %v1213_v4  ;;  %v812_v13 = vpop.f32.mrf.mxu1 }
 0x211   : > { %v1489_v14 = vpop.eup %1488  ;;  %1512 = vrcp.f32 %v944_v9  ;;  %v945_v18 = vadd.f32 1.0, %v1487_v12  ;;  %v1215_v15 = vmul.f32 -1.442695, %v811_v11  ;;  %v813_v17 = vadd.f32 %v812_v13, %v1884_v35 }
 0x212   : > { %v1491_v19 = vpop.eup %1490  ;;  %1034 = vst [vmem:[%s1906_s17 + $0x38] sm:$0xff] %v1489_v14  ;;  %1514 = vpow2.f32 %v1214_v10  ;;  %v816_v20 = vpop.f32.mrf.mxu1 }
 0x213   : > { %1516 = vrcp.f32 %v945_v18  ;;  %v946_v21 = vadd.f32 1.0, %v1491_v19  ;;  %v1216_v22 = vmul.f32 -1.442695, %v813_v17  ;;  %v817_v23 = vadd.f32 %v816_v20, %v1882_v34 }
 0x214   : > { %v1493_v24 = vpop.eup %1492  ;;  %1518 = vpow2.f32 %v1215_v15  ;;  %v818_v25 = vpop.f32.mrf.mxu1 }
 0x215   : > { %v1495_v26 = vpop.eup %1494  ;;  %1035 = vst [vmem:[%s1906_s17 + $0x40] sm:$0xff] %v1493_v24  ;;  %1520 = vrcp.f32 %v946_v21  ;;  %v1217_v27 = vmul.f32 -1.442695, %v817_v23  ;;  %v819_v28 = vadd.f32 %v818_v25, %v1884_v35 }
 0x216   : > { %v1497_v29 = vpop.eup %1496  ;;  %v947_v30 = vadd.f32 1.0, %v1495_v26  ;;  %1522 = vpow2.f32 %v1216_v22  ;;  %v820_v31 = vpop.f32.mrf.mxu1 }
 0x217   : > { %v1499_v32 = vpop.eup %1498  ;;  %1036 = vst [vmem:[%s1906_s17 + $0x48] sm:$0xff] %v1497_v29  ;;  %1524 = vpow2.f32 %v1217_v27  ;;  %v1218_v33 = vmul.f32 -1.442695, %v819_v28  ;;  %v821_v36 = vadd.f32 %v820_v31, %v1882_v34 }
 0x218   : > { %v1501_v37 = vpop.eup %1500  ;;  %1526 = vrcp.f32 %v947_v30  ;;  %v948_v16 = vadd.f32 1.0, %v1499_v32  ;;  %v822_v38 = vpop.f32.mrf.mxu1 }
 0x219   : > { %v1503_v39 = vpop.eup %1502  ;;  %1037 = vst [vmem:[%s1906_s17 + $0x50] sm:$0xff] %v1501_v37  ;;  %1528 = vpow2.f32 %v1218_v33  ;;  %v1219_v40 = vmul.f32 -1.442695, %v821_v36  ;;  %v823_v41 = vadd.f32 %v822_v38, %v1884_v35 }
 0x21a   : > { %v1505_v42 = vpop.eup %1504  ;;  %1530 = vrcp.f32 %v948_v16  ;;  %v949_v43 = vadd.f32 1.0, %v1503_v39  ;;  %v826_v44 = vpop.f32.mrf.mxu1 }
 0x21b   : > { %v1507_v45 = vpop.eup %1506  ;;  %1038 = vst [vmem:[%s1906_s17 + $0x58] sm:$0xff] %v1505_v42  ;;  %1532 = vpow2.f32 %v1219_v40  ;;  %v1220_v46 = vmul.f32 -1.442695, %v823_v41  ;;  %v827_v47 = vadd.f32 %v826_v44, %v1882_v34 }
 0x21c   : > { %v1509_v48 = vpop.eup %1508  ;;  %1534 = vrcp.f32 %v949_v43  ;;  %v950_v49 = vadd.f32 1.0, %v1507_v45  ;;  %v828_v50 = vpop.f32.mrf.mxu1 }
 0x21d   : > { %v1511_v51 = vpop.eup %1510  ;;  %1039 = vst [vmem:[%s1906_s17 + $0x60] sm:$0xff] %v1509_v48  ;;  %1536 = vpow2.f32 %v1220_v46  ;;  %v1221_v52 = vmul.f32 -1.442695, %v827_v47  ;;  %v829_v53 = vadd.f32 %v828_v50, %v1884_v35 }
 0x21e   : > { %v1513_v54 = vpop.eup %1512  ;;  %1538 = vrcp.f32 %v950_v49  ;;  %v951_v55 = vadd.f32 1.0, %v1511_v51  ;;  %v830_v56 = vpop.f32.mrf.mxu1 }
 0x21f   : > { %v1515_v57 = vpop.eup %1514  ;;  %1040 = vst [vmem:[%s1906_s17 + $0x68] sm:$0xff] %v1513_v54  ;;  %1540 = vpow2.f32 %v1221_v52  ;;  %v1222_v58 = vmul.f32 -1.442695, %v829_v53  ;;  %v831_v59 = vadd.f32 %v830_v56, %v1882_v34 }
 0x220   : > { %v1517_v60 = vpop.eup %1516  ;;  %1542 = vrcp.f32 %v951_v55  ;;  %v952_v61 = vadd.f32 1.0, %v1515_v57  ;;  %v832_v62 = vpop.f32.mrf.mxu1 }
 0x221   : > { %v1519_v63 = vpop.eup %1518  ;;  %1041 = vst [vmem:[%s1906_s17 + $0x70] sm:$0xff] %v1517_v60  ;;  %1544 = vpow2.f32 %v1222_v58  ;;  %v1223_v0 = vmul.f32 -1.442695, %v831_v59  ;;  %v833_v1 = vadd.f32 %v832_v62, %v1884_v35 }
 0x222   : > { %v1521_v2 = vpop.eup %1520  ;;  %1546 = vrcp.f32 %v952_v61  ;;  %v953_v3 = vadd.f32 1.0, %v1519_v63 }
 0x223   : > { %v1523_v4 = vpop.eup %1522  ;;  %1042 = vst [vmem:[%s1906_s17 + $0x78] sm:$0xff] %v1521_v2  ;;  %1548 = vpow2.f32 %v1223_v0  ;;  %v1224_v5 = vmul.f32 -1.442695, %v833_v1 }
 0x224   : > { %v1525_v34 = vpop.eup %1524  ;;  %1550 = vrcp.f32 %v953_v3  ;;  %v954_v6 = vadd.f32 1.0, %v1523_v4 }
 0x225   : > { %v1527_v7 = vpop.eup %1526  ;;  %v955_v8 = vadd.f32 1.0, %v1525_v34  ;;  %1552 = vpow2.f32 %v1224_v5 }
 0x226   : > { %v1529_v9 = vpop.eup %1528  ;;  %1043 = vst [vmem:[%s1906_s17 + $0x80] sm:$0xff] %v1527_v7  ;;  %1554 = vrcp.f32 %v954_v6 }
 0x227   : > { %v1531_v35 = vpop.eup %1530  ;;  %1556 = vrcp.f32 %v955_v8  ;;  %v956_v10 = vadd.f32 1.0, %v1529_v9 }
 0x228   : > { %v1533_v11 = vpop.eup %1532  ;;  %1044 = vst [vmem:[%s1906_s17 + $0x88] sm:$0xff] %v1531_v35 }
 0x229   : > { %v1535_v12 = vpop.eup %1534  ;;  %1558 = vrcp.f32 %v956_v10  ;;  %v957_v13 = vadd.f32 1.0, %v1533_v11 }
 0x22a   : > { %v1537_v14 = vpop.eup %1536  ;;  %1045 = vst [vmem:[%s1906_s17 + $0x90] sm:$0xff] %v1535_v12 }
 0x22b   : > { %v1539_v18 = vpop.eup %1538  ;;  %1560 = vrcp.f32 %v957_v13  ;;  %v958_v15 = vadd.f32 1.0, %v1537_v14 }
 0x22c   : > { %v1541_v17 = vpop.eup %1540  ;;  %1046 = vst [vmem:[%s1906_s17 + $0x98] sm:$0xff] %v1539_v18 }
 0x22d   : > { %v1543_v19 = vpop.eup %1542  ;;  %1562 = vrcp.f32 %v958_v15  ;;  %v959_v20 = vadd.f32 1.0, %v1541_v17 }
 0x22e   : > { %v1545_v21 = vpop.eup %1544  ;;  %1047 = vst [vmem:[%s1906_s17 + $0xa0] sm:$0xff] %v1543_v19 }
 0x22f   : > { %v1547_v22 = vpop.eup %1546  ;;  %1564 = vrcp.f32 %v959_v20  ;;  %v960_v23 = vadd.f32 1.0, %v1545_v21 }
 0x230   : > { %v1549_v24 = vpop.eup %1548  ;;  %1048 = vst [vmem:[%s1906_s17 + $0xa8] sm:$0xff] %v1547_v22 }
 0x231   : > { %v1551_v25 = vpop.eup %1550  ;;  %1566 = vrcp.f32 %v960_v23  ;;  %v961_v26 = vadd.f32 1.0, %v1549_v24 }
 0x232   : > { %v1553_v27 = vpop.eup %1552  ;;  %1049 = vst [vmem:[%s1906_s17 + $0xb0] sm:$0xff] %v1551_v25 }
 0x233   : > { %v1555_v28 = vpop.eup %1554  ;;  %1568 = vrcp.f32 %v961_v26  ;;  %v962_v29 = vadd.f32 1.0, %v1553_v27 }
 0x234   : > { %v1557_v30 = vpop.eup %1556  ;;  %1050 = vst [vmem:[%s1906_s17 + $0xb8] sm:$0xff] %v1555_v28 }
 0x235   : > { %1051 = vst [vmem:[%s1906_s17 + $0xc0] sm:$0xff] %v1557_v30  ;;  %1570 = vrcp.f32 %v962_v29 }
 0x236   : > { %v1559_v31 = vpop.eup %1558 }
 0x237   : > { %1052 = vst [vmem:[%s1906_s17 + $0xc8] sm:$0xff] %v1559_v31 }
 0x238   : > { %v1561_v32 = vpop.eup %1560 }
 0x239   : > { %1053 = vst [vmem:[%s1906_s17 + $0xd0] sm:$0xff] %v1561_v32 }
 0x23a   : > { %v1563_v33 = vpop.eup %1562 }
 0x23b   : > { %1054 = vst [vmem:[%s1906_s17 + $0xd8] sm:$0xff] %v1563_v33 }
 0x23c   : > { %v1565_v36 = vpop.eup %1564 }
 0x23d   : > { %1055 = vst [vmem:[%s1906_s17 + $0xe0] sm:$0xff] %v1565_v36 }
 0x23e   : > { %v1567_v37 = vpop.eup %1566 }
 0x23f   : > { %1056 = vst [vmem:[%s1906_s17 + $0xe8] sm:$0xff] %v1567_v37 }
 0x240   : > { %v1569_v16 = vpop.eup %1568 }
 0x241   : > { %1057 = vst [vmem:[%s1906_s17 + $0xf0] sm:$0xff] %v1569_v16 }
 0x242   : > { %v1571_v38 = vpop.eup %1570 }
 0x243   : > { %1058 = vst [vmem:[%s1906_s17 + $0xf8] sm:$0xff] %v1571_v38 }
 0x244   : > { %1585 = shalt.err (!%p1582_p3)
}
 0x245   : > { %s1586_s11 = scalar_lea.hbm %s1958_s30, 4096  ;;  %s1590_s14 = scalar_lea.hbm %s2011_s5, 8192 }
 0x246   : > { %p1587_p4 = scmp.ne.s32.totalorder %s1958_s30, %s1586_s11  ;;  %p1591_p9 = scmp.lt.s32.totalorder %s1958_s30, %s2011_s5 }
 0x247   : > { %p1592_p10 = scmp.lt.s32.totalorder %s1590_s14, %s1586_s11 }
 0x248   : > { %p1588_p7 = pnand %p1587_p4, %p1706_p5 }
 0x249   : > { %p1593_p11 = por %p1592_p10, %p1591_p9 }
 0x24a   : > { %p1589_p8 = pneg %p1588_p7 }
 0x24c   : > { %p1594_p12 = pnand %p1593_p11, %p1589_p8 }
 0x24e   : > { %1597 = shalt.err (!%p1594_p12)
}
 0x24f   : > { %s1636_s17 = smov 256   ;;  %s1637_s23 = smov 16  }
 0x250   : > { %1298 = dma.vmem_to_hbm [thread:$0]  (%p1706_p5), %s1960_s12, 4096, %s1958_s30, %s1966_s6, %s1636_s17, %s1636_s17, %s1637_s23  }
 0x251 PF: > { %p1304_p13 = scmp.ge.s32.totalorder %s1632_s21, 2  ;;  %s1089_s25 = sand.u32 1, %s1620_s18  }
 0x252   : > { %s1090_s26 = scalar_lea.sflag [#allocation3], %s1089_s25 }
 0x253   : > { %p1301_p0 = pnand %p1304_p13, %p1710_p6 }
 0x255   : > { %p1302_p1 = pneg %p1301_p0 }
 0x257   : > { %1615 = dma.done.wait (%p1302_p1), %s1090_s26, 4096  }
 0x258   : > { %1617 = vsyncadd (%p1302_p1), %s1090_s26, 4294963200  ;;  %p15_p2 = scmp.ge.s32.totalorder %s1693_s24, 4   ;;  %s2014_s18 = smov %s1624_s19 }
 0x259   : > { %s2015_s19 = smov %s1628_s20  ;;  %s2016_s20 = smov %s1704_s27 }
 0x25a   : > { %s2017_s21 = smov %s1693_s24  ;;  %17 = sbr.rel (!%p15_p2) target bundleno = 3 (0x3), region = 75 }
 0x25f   :  { %1095 = vsyncpa [#allocation3], 1 }
 0x260   :  { %1097 = vsyncpa [#allocation3 + $0x1], 1 }

</bundles_post_ra>
